<compile_context>
chip_gen: v6e
topology: v6e:2x2x1
jax: 0.10.0
libtpu: 0.0.40
codegen_flags: <defaults>
</compile_context>

<pallas_src>
import jax
import jax.numpy as jnp
from jax.experimental import pallas as pl
from jax.experimental.pallas import tpu as pltpu


def _rup(x, m):
    return ((x + m - 1) // m) * m


def _outconv_kernel(x_ref, w1_ref, scale_ref, shift_ref, w2_ref, b2_ref, o_ref):
    """y = W2 @ relu((W1 @ x) * scale + shift) + b2 on a (bn, Cin, tm) pixel slab."""
    w1 = w1_ref[...]            # (Cin, Cin)
    w2 = w2_ref[...]            # (Cout, Cin)
    scale = scale_ref[...]      # (Cin, 1) -- BN scale, broadcast over lanes
    shift = shift_ref[...]      # (Cin, 1) -- fused (b1 - mean)*scale + beta
    b2 = b2_ref[...]            # (Cout, 1)
    bn = x_ref.shape[0]         # static, small
    for b in range(bn):
        h = jnp.dot(w1, x_ref[b], preferred_element_type=jnp.float32)   # (Cin, tm)
        h = jnp.maximum(h * scale + shift, 0.0)                          # BN + ReLU
        y = jnp.dot(w2, h, preferred_element_type=jnp.float32)           # (Cout, tm)
        o_ref[b] = (y + b2).astype(o_ref.dtype)


_IN_BUFS = 3     # pl.Buffered(3) on the x spec (when grid is deep enough)
_OUT_BUFS = 2


def _vmem_plan():
    """(block byte budget for buffered in+out tiles, vmem_limit_bytes or None)."""
    kind = ""
    try:
        kind = jax.devices()[0].device_kind.lower()
    except Exception:
        pass
    if "v7" in kind:                 # 64 MiB / TC physical: keep footprint well under
        return 20 << 20, 40 << 20
    if "v6" in kind:                 # 128 MiB physical, fast HBM: big tiles pay off
        return 40 << 20, 64 << 20
    if "v5" in kind:
        return 12 << 20, 24 << 20
    return 8 << 20, None             # unknown chip: stay conservative, no override


def _pick_spatial_tile(hw, cap_px):
    """Return (tm, hw_padded)."""
    if hw <= cap_px:
        return hw, hw                # whole image per step; full-extent block is legal
    lo = max(128, ((cap_px // 2) // 128) * 128)
    t = (cap_px // 128) * 128
    while t >= lo:                   # prefer a big 128-aligned divisor (no padding)
        if hw % t == 0:
            return t, hw
        t -= 128
    tm = (cap_px // 128) * 128       # otherwise pad HW up to a multiple of the tile
    return tm, _rup(hw, tm)


def _pick_batch_fold(n, hw, tm, cap_px):
    """Fold several images per grid step when the whole image fits the budget."""
    if tm != hw:
        return 1
    for cand in range(n, 0, -1):
        if n % cand:
            continue
        if cand * hw > cap_px:
            continue
        if n >= 2 and (n // cand) < 2:
            continue                 # keep >= 2 grid programs (megacore / v7x 2 TCs)
        return cand
    return 1


def outconv_forward(x_nchw, params):
    """x_nchw: (N, Cin, H, W) float32.  Returns (N, Cout, H, W)."""
    w1, b1 = params["w1"], params["b1"]
    gamma, beta = params["gamma"], params["beta"]
    run_mean, run_var = params["run_mean"], params["run_var"]
    w2, b2 = params["w2"], params["b2"]
    eps = 1e-5

    N, Cin, H, W = x_nchw.shape
    Cout = w2.shape[0]
    HW = H * W

    # Inference-mode BN folded together with the conv1 bias into one affine:
    #   (W1 x + b1 - mean) * gamma/sqrt(var+eps) + beta == (W1 x) * scale + shift
    scale = gamma / jnp.sqrt(run_var + eps)
    shift = (b1 - run_mean) * scale + beta
    scale_c = scale.reshape(Cin, 1)
    shift_c = shift.reshape(Cin, 1)
    w1_m = w1[:, :, 0, 0]            # (Cin, Cin)
    w2_m = w2[:, :, 0, 0]            # (Cout, Cin)
    b2_c = b2.reshape(Cout, 1)

    # Tile sizing against a per-generation VMEM budget (sublane-padded f32,
    # buffered input + output bytes per pixel per image).
    block_budget, vmem_limit = _vmem_plan()
    bytes_per_px = _rup(Cin, 8) * 4 * _IN_BUFS + _rup(Cout, 8) * 4 * _OUT_BUFS
    cap_px = max(128, ((block_budget // bytes_per_px) // 128) * 128)

    tm, hw_pad = _pick_spatial_tile(HW, cap_px)
    bn = _pick_batch_fold(N, HW, tm, cap_px)

    # NCHW kept as-is: spatial dims viewed as one lane-dense axis (pad if needed).
    x3 = x_nchw.reshape(N, Cin, HW)
    if hw_pad != HW:
        x3 = jnp.pad(x3, ((0, 0), (0, 0), (0, hw_pad - HW)))

    grid = (N // bn, hw_pad // tm)
    n_steps = grid[0] * grid[1]

    if n_steps >= _IN_BUFS:
        x_spec = pl.BlockSpec((bn, Cin, tm), lambda n, i: (n, 0, i),
                              pipeline_mode=pl.Buffered(_IN_BUFS))
    else:
        x_spec = pl.BlockSpec((bn, Cin, tm), lambda n, i: (n, 0, i))

    cp_kwargs = dict(dimension_semantics=("parallel", "parallel"))
    if vmem_limit is not None:
        cp_kwargs["vmem_limit_bytes"] = vmem_limit

    out3 = pl.pallas_call(
        _outconv_kernel,
        out_shape=jax.ShapeDtypeStruct((N, Cout, hw_pad), x_nchw.dtype),
        grid=grid,
        in_specs=[
            x_spec,                                              # x slab
            pl.BlockSpec((Cin, Cin), lambda n, i: (0, 0)),       # W1
            pl.BlockSpec((Cin, 1), lambda n, i: (0, 0)),         # bn scale
            pl.BlockSpec((Cin, 1), lambda n, i: (0, 0)),         # fused shift
            pl.BlockSpec((Cout, Cin), lambda n, i: (0, 0)),      # W2
            pl.BlockSpec((Cout, 1), lambda n, i: (0, 0)),        # b2
        ],
        out_specs=pl.BlockSpec((bn, Cout, tm), lambda n, i: (n, 0, i)),
        compiler_params=pltpu.CompilerParams(**cp_kwargs),
    )(x3, w1_m, scale_c, shift_c, w2_m, b2_c)

    if hw_pad != HW:
        out3 = out3[:, :, :HW]
    return out3.reshape(N, Cout, H, W)


def init_params(key, in_channels, out_channels):
    k1, k2, k3, k4 = jax.random.split(key, 4)
    # Conv2d default init ~ U(-1/sqrt(fan_in), 1/sqrt(fan_in)), fan_in = in_channels
    bound = 1.0 / jnp.sqrt(in_channels)
    w1 = jax.random.uniform(k1, (in_channels, in_channels, 1, 1),
                            jnp.float32, -bound, bound)
    b1 = jax.random.uniform(k2, (in_channels,), jnp.float32, -bound, bound)
    w2 = jax.random.uniform(k3, (out_channels, in_channels, 1, 1),
                            jnp.float32, -bound, bound)
    b2 = jax.random.uniform(k4, (out_channels,), jnp.float32, -bound, bound)
    return {
        "w1": w1, "b1": b1,
        "gamma": jnp.ones((in_channels,), jnp.float32),
        "beta": jnp.zeros((in_channels,), jnp.float32),
        "run_mean": jnp.zeros((in_channels,), jnp.float32),
        "run_var": jnp.ones((in_channels,), jnp.float32),
        "w2": w2, "b2": b2,
    }


if __name__ == "__main__":
    key = jax.random.PRNGKey(0)
    kx, kp = jax.random.split(key)

    N, Cin, H, W = 2, 4, 16, 16
    Cout = 2
    x = jax.random.normal(kx, (N, Cin, H, W), jnp.float32)
    params = init_params(kp, Cin, Cout)

    out = outconv_forward(x, params)
    out = jax.block_until_ready(out)

    # Pure-JAX reference of the same (unfused) module forward:
    #   y = Conv1x1_2( relu( BN( Conv1x1_1(x) ) ) )
    eps = 1e-5
    w1m = params["w1"][:, :, 0, 0]
    w2m = params["w2"][:, :, 0, 0]
    xf = jnp.transpose(x, (0, 2, 3, 1)).reshape(-1, Cin)
    h = xf @ w1m.T + params["b1"]
    scale = params["gamma"] / jnp.sqrt(params["run_var"] + eps)
    shift = params["beta"] - params["run_mean"] * scale
    h = jnp.maximum(h * scale + shift, 0.0)
    ref = jnp.transpose((h @ w2m.T + params["b2"]).reshape(N, H, W, Cout),
                        (0, 3, 1, 2))

    assert out.shape == (N, Cout, H, W)
    # Small slack over exact f32 for accumulation-order / affine-fusion rounding.
    assert jnp.allclose(out, ref, atol=1e-4, rtol=1e-4), \
        float(jnp.max(jnp.abs(out - ref)))

    print("KERNEL_OK")
</pallas_src>

<mosaic_0001>
module attributes {stable_mosaic.version = 11 : i64} {
  func.func @_outconv_kernel(%arg0: i32, %arg1: i32, %arg2: memref<1x4x256xf32, #tpu.memory_space<vmem>>, %arg3: memref<4x4xf32, #tpu.memory_space<vmem>>, %arg4: memref<4x1xf32, #tpu.memory_space<vmem>>, %arg5: memref<4x1xf32, #tpu.memory_space<vmem>>, %arg6: memref<2x4xf32, #tpu.memory_space<vmem>>, %arg7: memref<2x1xf32, #tpu.memory_space<vmem>>, %arg8: memref<1x2x256xf32, #tpu.memory_space<vmem>>) attributes {dimension_semantics = [#tpu.dimension_semantics<parallel>, #tpu.dimension_semantics<parallel>], iteration_bounds = array<i64: 2, 1>, scalar_prefetch = 0 : i64, scratch_operands = 0 : i64, tpu.core_type = #tpu.core_type<tc>, window_params = [{transform_indices = @transform_0, window_bounds = array<i64: 1, 4, 256>}, {pipeline_mode = #tpu.pipeline_mode<synchronous>, transform_indices = @transform_1, window_bounds = array<i64: 4, 4>}, {pipeline_mode = #tpu.pipeline_mode<synchronous>, transform_indices = @transform_2, window_bounds = array<i64: 4, 1>}, {pipeline_mode = #tpu.pipeline_mode<synchronous>, transform_indices = @transform_3, window_bounds = array<i64: 4, 1>}, {pipeline_mode = #tpu.pipeline_mode<synchronous>, transform_indices = @transform_4, window_bounds = array<i64: 2, 4>}, {pipeline_mode = #tpu.pipeline_mode<synchronous>, transform_indices = @transform_5, window_bounds = array<i64: 2, 1>}, {transform_indices = @transform_6, window_bounds = array<i64: 1, 2, 256>}]} {
    %c0 = arith.constant 0 : index
    %c0_0 = arith.constant 0 : index
    %0 = vector.load %arg3[%c0, %c0_0] : memref<4x4xf32, #tpu.memory_space<vmem>>, vector<4x4xf32>
    %c0_1 = arith.constant 0 : index
    %c0_2 = arith.constant 0 : index
    %1 = vector.load %arg6[%c0_1, %c0_2] : memref<2x4xf32, #tpu.memory_space<vmem>>, vector<2x4xf32>
    %c0_3 = arith.constant 0 : index
    %c0_4 = arith.constant 0 : index
    %2 = vector.load %arg4[%c0_3, %c0_4] : memref<4x1xf32, #tpu.memory_space<vmem>>, vector<4x1xf32>
    %c0_5 = arith.constant 0 : index
    %c0_6 = arith.constant 0 : index
    %3 = vector.load %arg5[%c0_5, %c0_6] : memref<4x1xf32, #tpu.memory_space<vmem>>, vector<4x1xf32>
    %c0_7 = arith.constant 0 : index
    %c0_8 = arith.constant 0 : index
    %4 = vector.load %arg7[%c0_7, %c0_8] : memref<2x1xf32, #tpu.memory_space<vmem>>, vector<2x1xf32>
    %c0_9 = arith.constant 0 : index
    %c0_10 = arith.constant 0 : index
    %c0_11 = arith.constant 0 : index
    %5 = vector.load %arg2[%c0_9, %c0_10, %c0_11] : memref<1x4x256xf32, #tpu.memory_space<vmem>>, vector<1x4x256xf32>
    %6 = vector.shape_cast %5 : vector<1x4x256xf32> to vector<4x256xf32>
    %cst = arith.constant dense<0.000000e+00> : vector<4x256xf32>
    %7 = tpu.matmul %0, %6, %cst {dimension_numbers = #tpu.dot_dimension_numbers<[1], [0], [0], [1], [0, 0, 1, 1], [], []>} : vector<4x4xf32>, vector<4x256xf32>, vector<4x256xf32> -> vector<4x256xf32>
    %8 = vector.broadcast %2 : vector<4x1xf32> to vector<4x256xf32>
    %9 = arith.mulf %7, %8 : vector<4x256xf32>
    %10 = vector.broadcast %3 : vector<4x1xf32> to vector<4x256xf32>
    %11 = arith.addf %9, %10 : vector<4x256xf32>
    %cst_12 = arith.constant 0.000000e+00 : f32
    %12 = vector.broadcast %cst_12 : f32 to vector<4x256xf32>
    %13 = arith.maximumf %11, %12 : vector<4x256xf32>
    %cst_13 = arith.constant dense<0.000000e+00> : vector<2x256xf32>
    %14 = tpu.matmul %1, %13, %cst_13 {dimension_numbers = #tpu.dot_dimension_numbers<[1], [0], [0], [1], [0, 0, 1, 1], [], []>} : vector<2x4xf32>, vector<4x256xf32>, vector<2x256xf32> -> vector<2x256xf32>
    %15 = vector.broadcast %4 : vector<2x1xf32> to vector<2x256xf32>
    %16 = arith.addf %14, %15 : vector<2x256xf32>
    %c0_14 = arith.constant 0 : index
    %c0_15 = arith.constant 0 : index
    %c0_16 = arith.constant 0 : index
    %17 = vector.load %arg8[%c0_14, %c0_15, %c0_16] : memref<1x2x256xf32, #tpu.memory_space<vmem>>, vector<1x2x256xf32>
    %18 = vector.shape_cast %17 : vector<1x2x256xf32> to vector<2x256xf32>
    %19 = vector.shape_cast %16 : vector<2x256xf32> to vector<1x2x256xf32>
    tpu.vector_store %arg8[%c0_14, %c0_15, %c0_16], %19 {strides = array<i32>} : memref<1x2x256xf32, #tpu.memory_space<vmem>>, vector<1x2x256xf32>,
    return
  }
  func.func @transform_0(%arg0: i32, %arg1: i32) -> (i32, i32, i32) {
    %c0_i32 = arith.constant 0 : i32
    %c0_i32_0 = arith.constant 0 : i32
    return %arg0, %c0_i32, %arg1 : i32, i32, i32
  }
  func.func @transform_1(%arg0: i32, %arg1: i32) -> (i32, i32) {
    %c0_i32 = arith.constant 0 : i32
    %c0_i32_0 = arith.constant 0 : i32
    %c0_i32_1 = arith.constant 0 : i32
    return %c0_i32, %c0_i32_0 : i32, i32
  }
  func.func @transform_2(%arg0: i32, %arg1: i32) -> (i32, i32) {
    %c0_i32 = arith.constant 0 : i32
    %c0_i32_0 = arith.constant 0 : i32
    %c0_i32_1 = arith.constant 0 : i32
    return %c0_i32, %c0_i32_0 : i32, i32
  }
  func.func @transform_3(%arg0: i32, %arg1: i32) -> (i32, i32) {
    %c0_i32 = arith.constant 0 : i32
    %c0_i32_0 = arith.constant 0 : i32
    %c0_i32_1 = arith.constant 0 : i32
    return %c0_i32, %c0_i32_0 : i32, i32
  }
  func.func @transform_4(%arg0: i32, %arg1: i32) -> (i32, i32) {
    %c0_i32 = arith.constant 0 : i32
    %c0_i32_0 = arith.constant 0 : i32
    %c0_i32_1 = arith.constant 0 : i32
    return %c0_i32, %c0_i32_0 : i32, i32
  }
  func.func @transform_5(%arg0: i32, %arg1: i32) -> (i32, i32) {
    %c0_i32 = arith.constant 0 : i32
    %c0_i32_0 = arith.constant 0 : i32
    %c0_i32_1 = arith.constant 0 : i32
    return %c0_i32, %c0_i32_0 : i32, i32
  }
  func.func @transform_6(%arg0: i32, %arg1: i32) -> (i32, i32, i32) {
    %c0_i32 = arith.constant 0 : i32
    %c0_i32_0 = arith.constant 0 : i32
    return %arg0, %c0_i32, %arg1 : i32, i32, i32
  }
}

</mosaic_0001>

<bundles_post_ra>
// kernel: tpu_custom_call.1
= control target key start
LH: loop header
LB: loop body
LE: loop exit
PB: predicated region body
PF: predicated region fallthrough
CT: control target
= control target key end

     0   :  { %11 = vsyncpa [#allocation3], 0  ;;  %s986_s0 = inlined_call_operand.hbm [shape: f32[2,4,256], index: 0, kind: input, shape index: {}]   ;;  %s987_s1 = inlined_call_operand.vmem [shape: f32[4,4], index: 1, kind: input, shape index: {}]   ;;  %s988_s2 = inlined_call_operand.vmem [shape: f32[4,1], index: 2, kind: input, shape index: {}]   ;;  %s989_s3 = inlined_call_operand.vmem [shape: f32[4,1], index: 3, kind: input, shape index: {}]   ;;  %s990_s4 = inlined_call_operand.vmem [shape: f32[2,4], index: 4, kind: input, shape index: {}]   ;;  %s991_s5 = inlined_call_operand.vmem [shape: f32[2,1], index: 5, kind: input, shape index: {}]   ;;  %s992_s6 = inlined_call_operand.hbm [shape: f32[2,2,256], index: 6, kind: output, shape index: {}]  }
   0x1   :  { %13 = vsyncpa [#allocation3 + $0x1], 0 }
   0x2   :  { %14 = vsyncpa [#allocation4], 0 }
   0x3   :  { %16 = vsyncpa [#allocation4 + $0x1], 0  ;;  %s830_s21 = smov 0   ;;  %s832_s22 = smov 0  }
   0x4   :  { %s834_s23 = smov 0   ;;  %s836_s24 = smov 0  }
   0x5   :  { %s838_s25 = smov 0   ;;  %s840_s26 = smov 0  }
   0x6 LB: > { %s590_s27 = sadd.s32 4294967295, %s789_s26   ;;  %s591_s28 = sadd.s32 4294967294, %s789_s26   ;;  %s789_s26 = sphi %s840_s26, %s22_s26   ;;  %s785_s25 = sphi %s838_s25, %s1004_s25   ;;  %s781_s24 = sphi %s836_s24, %s1003_s24   ;;  %s777_s23 = sphi %s834_s23, %s1002_s23   ;;  %s773_s22 = sphi %s832_s22, %s1001_s22   ;;  %s769_s21 = sphi %s830_s21, %s1000_s21  }
   0x7   : > { %s34_s29 = sadd.s32 1, %s785_s25  ;;  %s43_s30 = sadd.s32 1, %s777_s23 }
   0x8   : > { %p36_p0 = scmp.ge.s32.totalorder %s34_s29, 2  ;;  %p50_p1 = scmp.ne.s32.totalorder %s777_s23, %s773_s22 }
   0x9   : > { %p51_p2 = scmp.eq.s32.totalorder %s789_s26, 0  ;;  %p56_p3 = scmp.ne.s32.totalorder %s773_s22, %s769_s21 }
   0xa   : > { %s1006_s29 = smov (%p36_p0, %s34_s29), 0  ;;  %p57_p5 = scmp.eq.s32.totalorder %s590_s27, 0 }
   0xb   : > { %p871_p4 = por %p51_p2, %p50_p1  ;;  %s38_s8 = ssub.s32 %s785_s25, %s1006_s29 }
   0xc   : > { %p187_p6 = scmp.eq.s32.totalorder %s590_s27, 1  ;;  %p41_p7 = scmp.eq.s32.totalorder %s38_s8, 0 }
   0xd   : > { %p877_p8 = por %p57_p5, %p56_p3  ;;  %p193_p10 = scmp.eq.s32.totalorder %s591_s28, 1 }
   0xe   : > { %p881_p9 = por %p187_p6, %p50_p1  ;;  %p626_p13 = scmp.lt.s32.totalorder %s789_s26, 2 }
   0xf   : > { %s886_s11 = scalar_select %p41_p7, %s777_s23, %s43_s30  }
  0x10   : > { %p888_p11 = por %p193_p10, %p56_p3  ;;  %s228_s13 = sand.u32 1, %s777_s23  }
  0x11   : > { %s594_s14 = sshll.u32 %s228_s13, 3  ;;  %s612_s15 = sshll.u32 %s785_s25, 7 }
  0x12   : > { %s996_s12 = scalar_select %p888_p11, 1, 0 }
  0x13   : > { %s240_s18 = scalar_lea.hbm %s986_s0, %s612_s15  ;;  %s232_s19 = scalar_lea.vmem [#allocation2], %s594_s14 }
  0x14   : > { %s242_s20 = sshll.u32 %s232_s19, 4  ;;  %p901_p0 = pnand %p626_p13, %p871_p4  ;;  %s243_s20 = int_to_ptr.vmem [resolvable:$true] %s242_s20 }
  0x15   : > { %p597_p1 = scmp.ge.s32.totalorder %s789_s26, 1  ;;  %p247_p2 = scmp.lt.s32.totalorder %s789_s26, 3 }
  0x16   : > { %s229_s28 = scalar_lea.sflag [#allocation3], %s228_s13  ;;  %p683_p3 = pneg %p901_p0 }
  0x17   : > { %s694_s30 = scalar_lea.vmem %s243_s20, 128  ;;  %s791_s8 = smov [#allocation2]  }
  0x18   : > { %p695_p5 = scmp.ne.s32.totalorder %s243_s20, %s694_s30  ;;  %s699_s15 = sshll.u32 %s791_s8, 4  ;;  %s700_s15 = int_to_ptr.vmem [resolvable:$false] %s699_s15 }
  0x19   : > { %s701_s14 = scalar_lea.vmem %s700_s15, 256  ;;  %p702_p10 = scmp.lt.s32.totalorder %s243_s20, %s700_s15 }
  0x1a   : > { %p697_p6 = pnand %p695_p5, %p683_p3  ;;  %p703_p12 = scmp.lt.s32.totalorder %s701_s14, %s694_s30 }
  0x1c   : > { %p698_p7 = pneg %p697_p6  ;;  %p704_p4 = por %p703_p12, %p702_p10 }
  0x1e   : > { %p705_p13 = pnand %p704_p4, %p698_p7 }
  0x20   : > { %708 = shalt.err (!%p705_p13)
}
  0x21   : > { %621 = dma.hbm_to_vmem [thread:$0]  (!%p901_p0), %s240_s18, 128, %s243_s20, %s229_s28  }
  0x22   : > { %p248_p11 = pnand %p597_p1, %p247_p2 }
  0x23   : > { %s916_s7 = sand.u32 (!%p248_p11), 1, %s773_s22  }
  0x24   : > { %251 = sbr.rel (%p248_p11) target bundleno = 462 (0x1ce), region = 44  ;;  %s598_s13 = sshll.u32 (!%p248_p11), %s916_s7, 3 }
  0x25   : > { %s254_s16 = scalar_lea.sflag (!%p248_p11), [#allocation3], %s916_s7  ;;  %s257_s17 = scalar_lea.vmem (!%p248_p11), [#allocation2], %s598_s13 }
  0x29   : > { %760 = dma.done.wait (%p877_p8), %s254_s16, 128  }
  0x2a   : > { %762 = vsyncadd (%p877_p8), %s254_s16, 4294967168  ;;  %v792_v0 = vmov 0.0   ;;  %v793_v1 = vmov 0   ;;  %v293_v2 = vld [vmem:[%s257_s17] sm:$0xff]  ;;  %vm300_vm0 = vcmask 1043456   ;;  %vm296_vm1 = vcmask 31744  }
  0x2b   : > { %369 = vmatprep.mubr.f32.mxu0 %v792_v0  ;;  %678 = vset.pattern.permute.xlu0 %v793_v1  ;;  %v290_v3 = vld [vmem:[%s988_s2] sm:$0xf]  ;;  %v295_v4 = vcombine.high %v293_v2, %v293_v2  ;;  %s599_s13 = sshll.u32 %s916_s7, 2  ;;  %s613_s16 = sshll.u32 %s781_s24, 6 }
  0x2c   : > { %470 = vmatprep.mubr.f32.mxu1 %v792_v0  ;;  %679 = vset.pattern.permute.xlu1 %v793_v1  ;;  %v288_v5 = vld [vmem:[%s987_s1] sm:$0xf]  ;;  %s285_s17 = scalar_lea.vmem [#allocation5], %s599_s13  ;;  %s504_s27 = scalar_lea.hbm %s992_s6, %s613_s16 }
  0x2d   : > { %378 = vperm.xlu0 %678, %v290_v3   ;;  %v291_v6 = vld [vmem:[%s989_s3] sm:$0xf]  ;;  %600 = vmatprep.subr.msk.mxu0 %vm300_vm0, %v295_v4  ;;  %s506_s18 = sshll.u32 %s285_s17, 4  ;;  %s490_s9 = scalar_lea.sflag [#allocation4], %s916_s7  ;;  %s507_s18 = int_to_ptr.vmem [resolvable:$true] %s506_s18 }
  0x2e   : > { %601 = vmatpush1.msk.msra.mxu0 %vm300_vm0, %v293_v2  ;;  %v292_v7 = vld [vmem:[%s991_s5] sm:$0x3]  ;;  %s709_s28 = scalar_lea.vmem %s507_s18, 64  ;;  %s794_s30 = smov [#allocation5]  }
  0x2f   : > { %602 = vmatmul.mubr.msk.f32.vlgmr.msra.gmra.mxu0 %vm296_vm1, %v288_v5  ;;  %394 = vperm.xlu1 %679, %v292_v7   ;;  %v289_v18 = vld [vmem:[%s990_s4] sm:$0x3]  ;;  %p710_p8 = scmp.ne.s32.totalorder %s507_s18, %s709_s28  ;;  %s713_s8 = sshll.u32 %s794_s30, 4  ;;  %s714_s8 = int_to_ptr.vmem [resolvable:$false] %s713_s8 }
  0x30   : > { %s715_s24 = scalar_lea.vmem %s714_s8, 128  ;;  %p716_p0 = scmp.lt.s32.totalorder %s507_s18, %s714_s8 }
  0x31   : > { %385 = vperm.xlu0 %678, %v291_v6   ;;  %p711_p11 = pnand %p710_p8, %p881_p9  ;;  %p717_p1 = scmp.lt.s32.totalorder %s715_s24, %s709_s28 }
  0x33   : > { %p712_p12 = pneg %p711_p11  ;;  %p718_p2 = por %p717_p1, %p716_p0 }
  0x35   : > { %p719_p3 = pnand %p718_p2, %p712_p12 }
  0xa8   : > { %v379_v8 = vpop.permute.xlu0 %378 }
  0xaa   : > { %v395_v19 = vpop.permute.xlu1 %394 }
  0xac   : > { %v386_v12 = vpop.permute.xlu0 %385 }
  0xef   : > { %v371_v9 = vpop.f32.mrf.mxu0 }
  0xf0   : > { %v381_v10 = vmul.f32 %v379_v8, %v371_v9 }
  0xf1   : > { %v373_v11 = vpop.f32.mrf.mxu0 }
  0xf2   : > { %v382_v13 = vmul.f32 %v379_v8, %v373_v11  ;;  %v388_v14 = vadd.f32 %v386_v12, %v381_v10 }
  0xf4   : > { %v389_v15 = vadd.f32 %v386_v12, %v382_v13  ;;  %v390_v17 = vmax.f32 %v388_v14, 0.0 }
  0xf6   : > { %v391_v16 = vmax.f32 %v389_v15, 0.0 }
  0xf8   : > { %603 = vmatprep.subr.msk.mxu1 %vm300_vm0, %v391_v16 }
  0xf9   : > { %604 = vmatpush1.msk.msra.mxu1 %vm300_vm0, %v390_v17 }
  0xfa   : > { %605 = vmatmul.mubr.msk.f32.vlgmr.msra.gmra.mxu1 %vm296_vm1, %v289_v18 }
 0x1ba   : > { %v472_v20 = vpop.f32.mrf.mxu1 }
 0x1bb   : > { %v473_v22 = vadd.f32 %v472_v20, %v395_v19 }
 0x1bc   : > { %v474_v21 = vpop.f32.mrf.mxu1 }
 0x1bd   : > { %v475_v23 = vadd.f32 %v474_v21, %v395_v19 }
 0x1bf   : > { %v479_v24 = vcombine.low %v473_v22, %v475_v23 }
 0x1c1   : > { %606 = vst.sshfl [vmem:[%s285_s17] sm:$0x33 pattern:$0x76325410] %v479_v24 }
 0x1c2   : > { %722 = shalt.err (!%p719_p3)
}
 0x1c3   : > { %s723_s15 = scalar_lea.hbm %s504_s27, 64  ;;  %s727_s13 = scalar_lea.hbm %s992_s6, 128 }
 0x1c4   : > { %p724_p5 = scmp.ne.s32.totalorder %s504_s27, %s723_s15  ;;  %p728_p10 = scmp.lt.s32.totalorder %s504_s27, %s992_s6 }
 0x1c5   : > { %p729_p4 = scmp.lt.s32.totalorder %s727_s13, %s723_s15 }
 0x1c6   : > { %p725_p6 = pnand %p724_p5, %p881_p9 }
 0x1c7   : > { %p730_p13 = por %p729_p4, %p728_p10 }
 0x1c8   : > { %p726_p7 = pneg %p725_p6 }
 0x1ca   : > { %p731_p8 = pnand %p730_p13, %p726_p7 }
 0x1cc   : > { %734 = shalt.err (!%p731_p8)
}
 0x1cd   : > { %616 = dma.vmem_to_hbm [thread:$0]  (%p881_p9), %s507_s18, 64, %s504_s27, %s490_s9  }
 0x1ce PF: > { %s518_s19 = sand.u32 1, %s769_s21   ;;  %p998_p11 = scmp.ne.s32.totalorder %s996_s12, 0 }
 0x1cf   : > { %p999_p12 = scmp.ge.s32.totalorder %s789_s26, 2  ;;  %s519_s20 = scalar_lea.sflag [#allocation4], %s518_s19 }
 0x1d1   : > { %p623_p0 = pnand %p999_p12, %p998_p11 }
 0x1d3   : > { %p624_p1 = pneg %p623_p0 }
 0x1d5   : > { %764 = dma.done.wait (%p624_p1), %s519_s20, 64  }
 0x1d6   : > { %766 = vsyncadd (%p624_p1), %s519_s20, 4294967232  ;;  %s22_s26 = sadd.s32 1, %s789_s26   ;;  %s1000_s21 = smov %s773_s22 }
 0x1d7   : > { %p19_p2 = scmp.ge.s32.totalorder %s22_s26, 4   ;;  %s1001_s22 = smov %s777_s23 }
 0x1d8   : > { %s1002_s23 = smov %s886_s11  ;;  %s1003_s24 = smov %s785_s25 }
 0x1d9   : > { %s1004_s25 = smov %s1006_s29  ;;  %21 = sbr.rel (!%p19_p2) target bundleno = 6 (0x6), region = 89 }
 0x1de   :  { %524 = vsyncpa [#allocation3], 1 }
 0x1df   :  { %526 = vsyncpa [#allocation3 + $0x1], 1 }
 0x1e0   :  { %527 = vsyncpa [#allocation4], 1 }
 0x1e1   :  { %529 = vsyncpa [#allocation4 + $0x1], 1 }

</bundles_post_ra>
